<compile_context>
chip_gen: v7x
topology: tpu7x:2x2x1
jax: 0.10.0
libtpu: 0.0.40
codegen_flags: <defaults>
</compile_context>

<pallas_src>
import functools
import math

import jax
import jax.numpy as jnp
from jax.experimental import pallas as pl
from jax.experimental.pallas import tpu as pltpu

TWO_PI = 2.0 * math.pi


def _round_up(x, m):
    return ((x + m - 1) // m) * m


def audioflow_kernel(audio_ref, noise_ref, w_in_a_ref, w_in_n_ref, b_in_ref,
                     w_pred_ref, b_pred_ref, out_ref):
    # audio_ref / noise_ref : (1, TT, M)  f32   (natural channel width)
    # w_in_a / w_in_n       : (M, Dp)     bf16  (W_in rows for audio / noise)
    # b_in                  : (1, Dp)     f32
    # w_pred                : (Dp, Mp)    bf16
    # b_pred                : (1, Mp)     f32
    # out_ref               : (1, TT, Mp) f32
    a = audio_ref[0].astype(jnp.bfloat16)                      # (TT, M)
    n = noise_ref[0].astype(jnp.bfloat16)                      # (TT, M)

    # transformer_input(cat([audio, noise], dim=-1))
    h = (jnp.dot(a, w_in_a_ref[...], preferred_element_type=jnp.float32)
         + jnp.dot(n, w_in_n_ref[...], preferred_element_type=jnp.float32)
         + b_in_ref[...])                                       # (TT, Dp) f32

    # TODO(synk): ConvPositionEmbed + Transformer (and the appended time token)
    # were not provided; treated as identity, so the time-token row never
    # reaches the sliced output and is handled entirely outside the kernel.

    # prediction: Linear(n_dim, n_mels)
    y = (jnp.dot(h.astype(jnp.bfloat16), w_pred_ref[...],
                 preferred_element_type=jnp.float32)
         + b_pred_ref[...])                                     # (TT, Mp) f32
    out_ref[0] = y


@functools.partial(jax.jit, static_argnames=("tile_t",))
def audioflow_forward(audio, noise, times, params, *, tile_t=256):
    B, T, M = audio.shape
    D = params["w_in"].shape[1]

    # MXU / lane-friendly padded output dims; T-tile is a multiple of 8 sublanes.
    Dp = _round_up(D, 128)
    Mp = _round_up(M, 128)
    TT = min(tile_t, _round_up(T, 8))
    Tp = _round_up(T, TT)

    # Only the sequence axis is zero-padded; channels stay at natural width.
    audio_p = jnp.pad(audio.astype(jnp.float32), ((0, 0), (0, Tp - T), (0, 0)))
    noise_p = jnp.pad(noise.astype(jnp.float32), ((0, 0), (0, Tp - T), (0, 0)))

    # Zero-padded weights (padded cols/rows are zero so padded lanes stay zero).
    w_in = jnp.pad(params["w_in"], ((0, 0), (0, Dp - D))).astype(jnp.bfloat16)
    w_in_a, w_in_n = w_in[:M], w_in[M:]                      # (M, Dp) each
    b_in = jnp.pad(params["b_in"].reshape(1, D),
                   ((0, 0), (0, Dp - D))).astype(jnp.float32)
    w_pred = jnp.pad(params["w_pred"],
                     ((0, Dp - D), (0, Mp - M))).astype(jnp.bfloat16)
    b_pred = jnp.pad(params["b_pred"].reshape(1, M),
                     ((0, 0), (0, Mp - M))).astype(jnp.float32)

    # LearnedSinusoidalPosEmb(times) (B x D total) — with the conv/transformer
    # identity stubs its appended token is dropped by output[:, :-1, :], so it
    # is not fed to the kernel.
    # TODO(synk): route the time token through ConvPositionEmbed and the
    # Transformer once their definitions are available.
    freqs = times.astype(jnp.float32)[:, None] * params["sinu_w"][None, :] * TWO_PI
    _sinu = jnp.concatenate([jnp.sin(freqs), jnp.cos(freqs)], axis=-1)   # (B, D)

    out = pl.pallas_call(
        audioflow_kernel,
        out_shape=jax.ShapeDtypeStruct((B, Tp, Mp), jnp.float32),
        grid_spec=pltpu.PrefetchScalarGridSpec(
            num_scalar_prefetch=0,
            grid=(B, Tp // TT),
            in_specs=[
                pl.BlockSpec((1, TT, M), lambda b, t: (b, t, 0)),   # audio
                pl.BlockSpec((1, TT, M), lambda b, t: (b, t, 0)),   # noise
                pl.BlockSpec((M, Dp), lambda b, t: (0, 0)),         # W_in[:M]  (resident)
                pl.BlockSpec((M, Dp), lambda b, t: (0, 0)),         # W_in[M:]  (resident)
                pl.BlockSpec((1, Dp), lambda b, t: (0, 0)),         # b_in      (resident)
                pl.BlockSpec((Dp, Mp), lambda b, t: (0, 0)),        # W_pred    (resident)
                pl.BlockSpec((1, Mp), lambda b, t: (0, 0)),         # b_pred    (resident)
            ],
            out_specs=pl.BlockSpec((1, TT, Mp), lambda b, t: (b, t, 0)),
        ),
        compiler_params=pltpu.CompilerParams(
            dimension_semantics=("parallel", "parallel")),
    )(audio_p, noise_p, w_in_a, w_in_n, b_in, w_pred, b_pred)

    # Drop T padding and the lane padding of n_mels.
    return out[:, :T, :M]


def audioflow_ref(audio, noise, times, params):
    """Pure-JAX reference mirroring the PyTorch forward (conv/transformer as
    identity); matmuls in bf16 with f32 accumulation to match the kernel."""
    x = jnp.concatenate([audio, noise], axis=-1).astype(jnp.bfloat16)
    h = jnp.dot(x, params["w_in"].astype(jnp.bfloat16),
                preferred_element_type=jnp.float32) + params["b_in"]          # (B, T, D)
    freqs = times[:, None] * params["sinu_w"][None, :] * TWO_PI               # (B, D//2)
    sinu = jnp.concatenate([jnp.sin(freqs), jnp.cos(freqs)], axis=-1)[:, None, :]
    seq = jnp.concatenate([h, sinu], axis=1)                                  # (B, T+1, D)
    y = jnp.dot(seq.astype(jnp.bfloat16), params["w_pred"].astype(jnp.bfloat16),
                preferred_element_type=jnp.float32) + params["b_pred"]        # (B, T+1, M)
    return y[:, :-1, :]


if __name__ == "__main__":
    # Small shapes; T=20 with tile_t=8 exercises T-tiling + tail padding.
    B, T, n_mels, n_dim = 2, 20, 8, 64

    key = jax.random.PRNGKey(0)
    ks = jax.random.split(key, 7)
    audio = jax.random.normal(ks[0], (B, T, n_mels), jnp.float32)
    noise = jax.random.normal(ks[1], (B, T, n_mels), jnp.float32)
    times = jax.random.uniform(ks[2], (B,), jnp.float32)

    params = {
        # transformer_input: Linear(2*n_mels, n_dim)  (stored (in, out))
        "w_in": jax.random.normal(ks[3], (2 * n_mels, n_dim), jnp.float32)
                / math.sqrt(2 * n_mels),
        "b_in": jax.random.normal(ks[4], (n_dim,), jnp.float32) * 0.1,
        # LearnedSinusoidalPosEmb: randn(n_dim // 2)
        "sinu_w": jax.random.normal(ks[4], (n_dim // 2,), jnp.float32),
        # prediction: Linear(n_dim, n_mels)
        "w_pred": jax.random.normal(ks[5], (n_dim, n_mels), jnp.float32)
                  / math.sqrt(n_dim),
        "b_pred": jax.random.normal(ks[6], (n_mels,), jnp.float32) * 0.01,
    }

    out = audioflow_forward(audio, noise, times, params, tile_t=8)
    jax.block_until_ready(out)

    ref = audioflow_ref(audio, noise, times, params)
    assert out.shape == (B, T, n_mels), out.shape
    assert jnp.allclose(out, ref, rtol=1e-2, atol=1e-2), \
        float(jnp.max(jnp.abs(out - ref)))

    print("KERNEL_OK")
</pallas_src>

<mosaic_0001>
module attributes {stable_mosaic.version = 11 : i64} {
  func.func @audioflow_kernel(%arg0: i32, %arg1: i32, %arg2: memref<1x8x8xf32, #tpu.memory_space<vmem>>, %arg3: memref<1x8x8xf32, #tpu.memory_space<vmem>>, %arg4: memref<8x128xbf16, #tpu.memory_space<vmem>>, %arg5: memref<8x128xbf16, #tpu.memory_space<vmem>>, %arg6: memref<1x128xf32, #tpu.memory_space<vmem>>, %arg7: memref<128x128xbf16, #tpu.memory_space<vmem>>, %arg8: memref<1x128xf32, #tpu.memory_space<vmem>>, %arg9: memref<1x8x128xf32, #tpu.memory_space<vmem>>) attributes {dimension_semantics = [#tpu.dimension_semantics<parallel>, #tpu.dimension_semantics<parallel>], iteration_bounds = array<i64: 2, 3>, scalar_prefetch = 0 : i64, scratch_operands = 0 : i64, tpu.core_type = #tpu.core_type<tc>, window_params = [{transform_indices = @transform_0, window_bounds = array<i64: 1, 8, 8>}, {transform_indices = @transform_1, window_bounds = array<i64: 1, 8, 8>}, {pipeline_mode = #tpu.pipeline_mode<synchronous>, transform_indices = @transform_2, window_bounds = array<i64: 8, 128>}, {pipeline_mode = #tpu.pipeline_mode<synchronous>, transform_indices = @transform_3, window_bounds = array<i64: 8, 128>}, {pipeline_mode = #tpu.pipeline_mode<synchronous>, transform_indices = @transform_4, window_bounds = array<i64: 1, 128>}, {pipeline_mode = #tpu.pipeline_mode<synchronous>, transform_indices = @transform_5, window_bounds = array<i64: 128, 128>}, {pipeline_mode = #tpu.pipeline_mode<synchronous>, transform_indices = @transform_6, window_bounds = array<i64: 1, 128>}, {transform_indices = @transform_7, window_bounds = array<i64: 1, 8, 128>}]} {
    %c0 = arith.constant 0 : index
    %c0_0 = arith.constant 0 : index
    %c0_1 = arith.constant 0 : index
    %0 = vector.load %arg2[%c0, %c0_0, %c0_1] : memref<1x8x8xf32, #tpu.memory_space<vmem>>, vector<1x8x8xf32>
    %1 = vector.shape_cast %0 : vector<1x8x8xf32> to vector<8x8xf32>
    %2 = arith.truncf %1 : vector<8x8xf32> to vector<8x8xbf16>
    %c0_2 = arith.constant 0 : index
    %c0_3 = arith.constant 0 : index
    %c0_4 = arith.constant 0 : index
    %3 = vector.load %arg3[%c0_2, %c0_3, %c0_4] : memref<1x8x8xf32, #tpu.memory_space<vmem>>, vector<1x8x8xf32>
    %4 = vector.shape_cast %3 : vector<1x8x8xf32> to vector<8x8xf32>
    %5 = arith.truncf %4 : vector<8x8xf32> to vector<8x8xbf16>
    %c0_5 = arith.constant 0 : index
    %c0_6 = arith.constant 0 : index
    %6 = vector.load %arg4[%c0_5, %c0_6] : memref<8x128xbf16, #tpu.memory_space<vmem>>, vector<8x128xbf16>
    %cst = arith.constant dense<0.000000e+00> : vector<8x128xf32>
    %7 = tpu.matmul %2, %6, %cst {dimension_numbers = #tpu.dot_dimension_numbers<[1], [0], [0], [1], [0, 0, 1, 1], [], []>} : vector<8x8xbf16>, vector<8x128xbf16>, vector<8x128xf32> -> vector<8x128xf32>
    %c0_7 = arith.constant 0 : index
    %c0_8 = arith.constant 0 : index
    %8 = vector.load %arg5[%c0_7, %c0_8] : memref<8x128xbf16, #tpu.memory_space<vmem>>, vector<8x128xbf16>
    %cst_9 = arith.constant dense<0.000000e+00> : vector<8x128xf32>
    %9 = tpu.matmul %5, %8, %cst_9 {dimension_numbers = #tpu.dot_dimension_numbers<[1], [0], [0], [1], [0, 0, 1, 1], [], []>} : vector<8x8xbf16>, vector<8x128xbf16>, vector<8x128xf32> -> vector<8x128xf32>
    %10 = arith.addf %7, %9 : vector<8x128xf32>
    %c0_10 = arith.constant 0 : index
    %c0_11 = arith.constant 0 : index
    %11 = vector.load %arg6[%c0_10, %c0_11] : memref<1x128xf32, #tpu.memory_space<vmem>>, vector<1x128xf32>
    %12 = vector.broadcast %11 : vector<1x128xf32> to vector<8x128xf32>
    %13 = arith.addf %10, %12 : vector<8x128xf32>
    %14 = arith.truncf %13 : vector<8x128xf32> to vector<8x128xbf16>
    %c0_12 = arith.constant 0 : index
    %c0_13 = arith.constant 0 : index
    %15 = vector.load %arg7[%c0_12, %c0_13] : memref<128x128xbf16, #tpu.memory_space<vmem>>, vector<128x128xbf16>
    %cst_14 = arith.constant dense<0.000000e+00> : vector<8x128xf32>
    %16 = tpu.matmul %14, %15, %cst_14 {dimension_numbers = #tpu.dot_dimension_numbers<[1], [0], [0], [1], [0, 0, 1, 1], [], []>} : vector<8x128xbf16>, vector<128x128xbf16>, vector<8x128xf32> -> vector<8x128xf32>
    %c0_15 = arith.constant 0 : index
    %c0_16 = arith.constant 0 : index
    %17 = vector.load %arg8[%c0_15, %c0_16] : memref<1x128xf32, #tpu.memory_space<vmem>>, vector<1x128xf32>
    %18 = vector.broadcast %17 : vector<1x128xf32> to vector<8x128xf32>
    %19 = arith.addf %16, %18 : vector<8x128xf32>
    %c0_17 = arith.constant 0 : index
    %c0_18 = arith.constant 0 : index
    %c0_19 = arith.constant 0 : index
    %20 = vector.load %arg9[%c0_17, %c0_18, %c0_19] : memref<1x8x128xf32, #tpu.memory_space<vmem>>, vector<1x8x128xf32>
    %21 = vector.shape_cast %20 : vector<1x8x128xf32> to vector<8x128xf32>
    %22 = vector.shape_cast %19 : vector<8x128xf32> to vector<1x8x128xf32>
    tpu.vector_store %arg9[%c0_17, %c0_18, %c0_19], %22 {strides = array<i32>} : memref<1x8x128xf32, #tpu.memory_space<vmem>>, vector<1x8x128xf32>,
    return
  }
  func.func @transform_0(%arg0: i32, %arg1: i32) -> (i32, i32, i32) {
    %c0_i32 = arith.constant 0 : i32
    %c0_i32_0 = arith.constant 0 : i32
    return %arg0, %arg1, %c0_i32 : i32, i32, i32
  }
  func.func @transform_1(%arg0: i32, %arg1: i32) -> (i32, i32, i32) {
    %c0_i32 = arith.constant 0 : i32
    %c0_i32_0 = arith.constant 0 : i32
    return %arg0, %arg1, %c0_i32 : i32, i32, i32
  }
  func.func @transform_2(%arg0: i32, %arg1: i32) -> (i32, i32) {
    %c0_i32 = arith.constant 0 : i32
    %c0_i32_0 = arith.constant 0 : i32
    %c0_i32_1 = arith.constant 0 : i32
    return %c0_i32, %c0_i32_0 : i32, i32
  }
  func.func @transform_3(%arg0: i32, %arg1: i32) -> (i32, i32) {
    %c0_i32 = arith.constant 0 : i32
    %c0_i32_0 = arith.constant 0 : i32
    %c0_i32_1 = arith.constant 0 : i32
    return %c0_i32, %c0_i32_0 : i32, i32
  }
  func.func @transform_4(%arg0: i32, %arg1: i32) -> (i32, i32) {
    %c0_i32 = arith.constant 0 : i32
    %c0_i32_0 = arith.constant 0 : i32
    %c0_i32_1 = arith.constant 0 : i32
    return %c0_i32, %c0_i32_0 : i32, i32
  }
  func.func @transform_5(%arg0: i32, %arg1: i32) -> (i32, i32) {
    %c0_i32 = arith.constant 0 : i32
    %c0_i32_0 = arith.constant 0 : i32
    %c0_i32_1 = arith.constant 0 : i32
    return %c0_i32, %c0_i32_0 : i32, i32
  }
  func.func @transform_6(%arg0: i32, %arg1: i32) -> (i32, i32) {
    %c0_i32 = arith.constant 0 : i32
    %c0_i32_0 = arith.constant 0 : i32
    %c0_i32_1 = arith.constant 0 : i32
    return %c0_i32, %c0_i32_0 : i32, i32
  }
  func.func @transform_7(%arg0: i32, %arg1: i32) -> (i32, i32, i32) {
    %c0_i32 = arith.constant 0 : i32
    %c0_i32_0 = arith.constant 0 : i32
    return %arg0, %arg1, %c0_i32 : i32, i32, i32
  }
}

</mosaic_0001>

<bundles_post_ra>
// kernel: audioflow_forward.1
= control target key start
LH: loop header
LB: loop body
LE: loop exit
PB: predicated region body
PF: predicated region fallthrough
CT: control target
= control target key end

     0   :  { %s867_s24 = smov 0   ;;  %s869_s25 = smov 0   ;;  %s971_s0 = inlined_call_operand.vmem [shape: f32[2,24,8], index: 0, kind: input, shape index: {}]   ;;  %s972_s1 = inlined_call_operand.vmem [shape: f32[2,24,8], index: 1, kind: input, shape index: {}]   ;;  %s973_s2 = inlined_call_operand.vmem [shape: bf16[8,128], index: 2, kind: input, shape index: {}]   ;;  %s974_s3 = inlined_call_operand.vmem [shape: bf16[8,128], index: 3, kind: input, shape index: {}]   ;;  %s975_s4 = inlined_call_operand.vmem [shape: f32[1,128], index: 4, kind: input, shape index: {}]   ;;  %s976_s5 = inlined_call_operand.vmem [shape: bf16[128,128], index: 5, kind: input, shape index: {}]   ;;  %s977_s6 = inlined_call_operand.vmem [shape: f32[1,128], index: 6, kind: input, shape index: {}]   ;;  %s978_s7 = inlined_call_operand.vmem [shape: f32[2,24,128], index: 7, kind: output, shape index: {}]  }
   0x1   :  { %s871_s26 = smov 0   ;;  %s873_s27 = smov 0  }
   0x2   :  { %s875_s28 = smov 0  }
   0x3 LB: > { %s26_s29 = sadd.s32 1, %s815_s26  ;;  %s29_s30 = sadd.s32 1, %s819_s27  ;;  %s823_s28 = sphi %s875_s28, %s17_s28   ;;  %s819_s27 = sphi %s873_s27, %s982_s27   ;;  %s815_s26 = sphi %s871_s26, %s981_s26   ;;  %s811_s25 = sphi %s869_s25, %s980_s25   ;;  %s807_s24 = sphi %s867_s24, %s979_s24  }
   0x4   : > { %p27_p0 = scmp.ge.s32.totalorder %s26_s29, 3  ;;  %p671_p1 = scmp.ge.s32.totalorder %s823_s28, 1 }
   0x5   : > { %p271_p2 = scmp.lt.s32.totalorder %s823_s28, 7 }
   0x6   : > { %s984_s29 = smov (%p27_p0, %s26_s29), 0  ;;  %s986_s30 = smov (!%p27_p0, %s29_s30), %s819_s27 }
   0x7   : > { %p272_p3 = pnand %p671_p1, %p271_p2  ;;  %p31_p4 = scmp.ge.s32.totalorder %s986_s30, 2 }
   0x8   : > { %v347_v0 = vld [vmem:[%s974_s3] sm:$0xf] (!%p272_p3)  ;;  %vm352_vm0 = vcmask (!%p272_p3), 1043456   ;;  %v825_v1 = vmov (!%p272_p3), 0.0   ;;  %p317_p5 = scmp.lt.s32.totalorder (!%p272_p3), %s811_s25, 1  ;;  %p319_p6 = scmp.lt.s32.totalorder (!%p272_p3), %s807_s24, 2 }
   0x9   : > { %s988_s30 = smov (%p31_p4, %s986_s30), 0  ;;  %275 = sbr.rel (%p272_p3) target bundleno = 466 (0x1d2), region = 48 }
   0xa   : > { %702 = vmatprep.subr.bf16.mxu1 (!%p272_p3), %v825_v1  ;;  %v354_v2 = vsel (!%p272_p3), %vm352_vm0, %v347_v0, 0  ;;  %714 = vmatprep.subr.bf16.mxu0 (!%p272_p3), %v825_v1  ;;  %vm826_vm1 = vmmov (!%p272_p3), 0   ;;  %v777_v3 = vld [vmem:[%s976_s5] sm:$0xff] (!%p272_p3)   ;;  %v778_v4 = vld [vmem:[%s976_s5 + $0x8] sm:$0xff] (!%p272_p3)   ;;  %v779_v6 = vld [vmem:[%s976_s5 + $0x10] sm:$0xff] (!%p272_p3)   ;;  %vm348_vm2 = vcmask (!%p272_p3), 64512  }
   0xb   : > { %703 = vmatpush3.bf16.msra.mxu1 (!%p272_p3), %v354_v2  ;;  %704 = vmatprep.mubr.msk.bf16.mxu1 (!%p272_p3), %vm826_vm1, %v825_v1  ;;  %v346_v5 = vld [vmem:[%s973_s2] sm:$0xf] (!%p272_p3)  ;;  %v780_v10 = vld [vmem:[%s976_s5 + $0x18] sm:$0xff] (!%p272_p3)   ;;  %v782_v14 = vld [vmem:[%s976_s5 + $0x28] sm:$0xff] (!%p272_p3)  }
   0xc   : > { %708 = vmatprep.subr.bf16.mxu1 (!%p272_p3), %v825_v1  ;;  %730 = vmatprep.mubr.msk.bf16.mxu0 (!%p272_p3), %vm826_vm1, %v825_v1  ;;  %v400_v8 = vsel (!%p272_p3), %vm352_vm0, %v346_v5, 0  ;;  %v781_v13 = vld [vmem:[%s976_s5 + $0x20] sm:$0xff] (!%p272_p3)   ;;  %v783_v15 = vld [vmem:[%s976_s5 + $0x30] sm:$0xff] (!%p272_p3)   ;;  %v784_v16 = vld [vmem:[%s976_s5 + $0x38] sm:$0xff] (!%p272_p3)  }
   0xd   : > { %715 = vmatpush3.bf16.msra.mxu0 (!%p272_p3), %v777_v3  ;;  %v677_v22 = vld [vmem:[%s975_s4] ss:$0 sm:$0xff] (!%p272_p3) }
   0xe   : > { %716 = vmatprep.subr.bf16.mxu0 (!%p272_p3), %v825_v1  ;;  %v678_v29 = vld [vmem:[%s977_s6] ss:$0 sm:$0xff] (!%p272_p3) }
  0x10   : > { %s990_s25 = smov (!%p317_p5, %s811_s25), 1  ;;  %s992_s24 = smov (!%p319_p6, %s807_s24), 2 }
  0x11   : > { %s734_s14 = smul.u32 3, %s990_s25  ;;  %717 = vmatpush3.bf16.msra.mxu0 %v778_v4 }
  0x12   : > { %718 = vmatprep.subr.bf16.mxu0 %v825_v1 }
  0x13   : > { %s322_s17 = sadd.s32 %s734_s14, %s992_s24 }
  0x14   : > { %s916_s18 = sshll.u32 %s322_s17, 3 }
  0x15   : > { %s332_s23 = scalar_lea.vmem %s972_s1, %s916_s18  ;;  %s324_s8 = scalar_lea.vmem %s971_s0, %s916_s18  ;;  %719 = vmatpush3.bf16.msra.mxu0 %v779_v6 }
  0x16   : > { %v344_v7 = vld [vmem:[%s332_s23] sm:$0xff]  ;;  %720 = vmatprep.subr.bf16.mxu0 %v825_v1 }
  0x17   : > { %v345_v9 = vpack.c.bf16 %v344_v7, %v344_v7  ;;  %v342_v11 = vld [vmem:[%s324_s8] sm:$0xff]  ;;  %s340_s8 = scalar_lea.vmem %s978_s7, %s916_s18 }
  0x18   : > { %v343_v12 = vpack.c.bf16 %v342_v11, %v342_v11 }
  0x19   : > { %705 = vmatmul.mubr.msk.bf16.vlgmr.msra.gmra.mrb[0].mxu1 %vm348_vm2, %v345_v9  ;;  %721 = vmatpush3.bf16.msra.mxu0 %v780_v10 }
  0x1a   : > { %709 = vmatpush3.bf16.msra.mxu1 %v400_v8  ;;  %710 = vmatprep.mubr.msk.bf16.mxu1 %vm826_vm1, %v825_v1 }
  0x1b   : > { %722 = vmatprep.subr.bf16.mxu0 %v825_v1 }
  0x1d   : > { %723 = vmatpush3.bf16.msra.mxu0 %v781_v13 }
  0x1e   : > { %724 = vmatprep.subr.bf16.mxu0 %v825_v1 }
  0x21   : > { %711 = vmatmul.mubr.msk.bf16.vlgmr.msra.gmra.mrb[4].mxu1 %vm348_vm2, %v343_v12  ;;  %725 = vmatpush3.bf16.msra.mxu0 %v782_v14 }
  0x22   : > { %726 = vmatprep.subr.bf16.mxu0 %v825_v1 }
  0x25   : > { %727 = vmatpush3.bf16.msra.mxu0 %v783_v15 }
  0x26   : > { %728 = vmatprep.subr.bf16.mxu0 %v825_v1 }
  0x29   : > { %729 = vmatpush3.bf16.msra.mxu0 %v784_v16 }
  0xec   : > { %v390_v17 = vpop.f32.mrb[0].mxu1 }
  0xed   : > { %v706_v18 = vpop.f32.mrb[1].mxu1 }
  0xee   : > { %v393_v19 = vpop.f32.mrb[2].mxu1 }
  0xef   : > { %v707_v20 = vpop.f32.mrb[3].mxu1 }
  0xf4   : > { %v436_v21 = vpop.f32.mrb[4].mxu1 }
  0xf5   : > { %v437_v23 = vadd.f32 %v436_v21, %v390_v17  ;;  %v712_v24 = vpop.f32.mrb[5].mxu1 }
  0xf6   : > { %v439_v25 = vpop.f32.mrb[6].mxu1 }
  0xf7   : > { %v449_v26 = vadd.f32 %v677_v22, %v437_v23  ;;  %v713_v27 = vpop.f32.mrb[7].mxu1 }
  0xf9   : > { %v450_v28 = vpack.c.bf16 %v449_v26, %v449_v26 }
  0xfb   : > { %731 = vmatmul.mubr.bf16.vlgmr.msra.gmra.mrb[0].mxu0 %v450_v28 }
 0x1ce   : > { %v556_v30 = vpop.f32.mrb[0].mxu0 }
 0x1cf   : > { %v557_v31 = vadd.f32 %v678_v29, %v556_v30  ;;  %v732_v32 = vpop.f32.mrb[1].mxu0 }
 0x1d0   : > { %v559_v33 = vpop.f32.mrb[2].mxu0 }
 0x1d1   : > { %562 = vst [vmem:[%s340_s8] sm:$0xff] %v557_v31  ;;  %v733_v34 = vpop.f32.mrb[3].mxu0 }
 0x1d2 PF: > { %s17_s28 = sadd.s32 1, %s823_s28   ;;  %s979_s24 = smov %s815_s26 }
 0x1d3   : > { %p14_p7 = scmp.ge.s32.totalorder %s17_s28, 8   ;;  %s980_s25 = smov %s819_s27 }
 0x1d4   : > { %s981_s26 = smov %s984_s29  ;;  %s982_s27 = smov %s988_s30 }
 0x1d5   :  { %16 = sbr.rel (!%p14_p7) target bundleno = 3 (0x3), region = 81 }

</bundles_post_ra>
